<compile_context>
chip_gen: v6e
topology: v6e:2x2x1
jax: 0.10.0
libtpu: 0.0.40
codegen_flags: <defaults>
</compile_context>

<pallas_src>
import functools

import jax
import jax.numpy as jnp
from jax.experimental import pallas as pl
from jax.experimental.pallas import tpu as pltpu

IN_FEATURES = 4
HIDDEN = 128
OUT_FEATURES = 2

# (group, batch) rows per grid step.  At B=8 this is Gb=256 groups per step.
# Per-step VMEM (f32, padded to (8,128) tiles):
#   x block   (Gb, 8, 128)  ~1 MiB  x2 (double buffered)
#   out block (Gb, 8, 128)  ~1 MiB  x2
#   h / softmax temporaries ~2-3 MiB
# => ~8 MiB total: fits every chip's default scoped VMEM with headroom.
_DEFAULT_ROWS_PER_BLOCK = 2048


def _policy_kernel(gb, batch, x_ref, w1_ref, b1_ref, w2_ref, b2_ref, o_ref):
    """One grid step: `gb` independent softmax groups of `batch` states each."""
    rows = gb * batch
    # (Gb, B, 4) -> (Gb*B, 4).  With B == 8 (one f32 sublane tile per group)
    # this merge is tile-aligned, i.e. no relayout.
    x = x_ref[...].reshape(rows, IN_FEATURES)

    # fc1 + fc2 on the MXU (one systolic pass each; the K=4 / N=2 padding is
    # irrelevant because the MXU is otherwise idle, and it frees the VPU/XLU
    # slots for ReLU and the softmax reductions).
    h = jnp.dot(x, w1_ref[...], preferred_element_type=jnp.float32)
    h = jnp.maximum(h + b1_ref[...], 0.0)                      # (Gb*B, 128)
    logits = jnp.dot(h, w2_ref[...], preferred_element_type=jnp.float32)
    logits = logits + b2_ref[...]                              # (Gb*B, 2)

    # softmax over dim=0 (the batch axis) independently per group and per
    # action column, numerically stable.  Tile-aligned unflatten when B == 8.
    l3 = logits.reshape(gb, batch, OUT_FEATURES)               # (Gb, B, 2)
    m = jnp.max(l3, axis=1, keepdims=True)                     # (Gb, 1, 2)
    e = jnp.exp(l3 - m)                                        # (Gb, B, 2)
    denom = jnp.sum(e, axis=1, keepdims=True)                  # (Gb, 1, 2)
    inv = 1.0 / denom                                          # exact (tiny)
    o_ref[...] = (e * inv).astype(o_ref.dtype)


def policy_forward_batched(x, w1, b1, w2, b2, *,
                           rows_per_block=_DEFAULT_ROWS_PER_BLOCK):
    """x: [G, B, 4] -> [G, B, 2]; softmax over dim=0 independently per group.

    G groups are processed Gb per grid step (grid = (ceil(G/Gb),)), with the
    group-block axis marked "parallel" so both v7x TensorCores get work; on
    v5e/v6e (single TC) the same choice simply minimizes per-step overhead.
    Weights are in their natural torch (out, in) layout and are transposed
    once here (XLA-side) so the kernel's dots need no in-kernel transposes.
    Prefer B a multiple of 8 (f32 sublane count) for relayout-free reshapes.
    """
    G, B, F = x.shape
    assert F == IN_FEATURES, f"expected {IN_FEATURES} input features, got {F}"

    w1_t = w1.T.astype(jnp.float32)                      # (4, 128)
    b1_row = b1.reshape(1, HIDDEN).astype(jnp.float32)   # (1, 128)
    w2_t = w2.T.astype(jnp.float32)                      # (128, 2)
    b2_row = b2.reshape(1, OUT_FEATURES).astype(jnp.float32)

    # Groups per block; pad G with zero groups so the grid divides evenly
    # (zero groups have a well-defined softmax and are sliced off below).
    gb = max(1, min(G, rows_per_block // max(B, 1)))
    nb = pl.cdiv(G, gb)
    g_pad = nb * gb
    if g_pad != G:
        x = jnp.concatenate(
            [x, jnp.zeros((g_pad - G, B, F), x.dtype)], axis=0)
    x = x.astype(jnp.float32)

    kernel = functools.partial(_policy_kernel, gb, B)
    out = pl.pallas_call(
        kernel,
        out_shape=jax.ShapeDtypeStruct((g_pad, B, OUT_FEATURES), jnp.float32),
        grid_spec=pl.GridSpec(
            grid=(nb,),
            in_specs=[
                pl.BlockSpec((gb, B, IN_FEATURES), lambda i: (i, 0, 0)),
                # Weights / biases stay VMEM-resident across all grid steps.
                pl.BlockSpec((IN_FEATURES, HIDDEN), lambda i: (0, 0)),
                pl.BlockSpec((1, HIDDEN), lambda i: (0, 0)),
                pl.BlockSpec((HIDDEN, OUT_FEATURES), lambda i: (0, 0)),
                pl.BlockSpec((1, OUT_FEATURES), lambda i: (0, 0)),
            ],
            out_specs=pl.BlockSpec((gb, B, OUT_FEATURES), lambda i: (i, 0, 0)),
        ),
        compiler_params=pltpu.CompilerParams(
            dimension_semantics=("parallel",)),   # megacore split on v7x
    )(x, w1_t, b1_row, w2_t, b2_row)
    return out[:G]


def policy_forward(x2d, w1, b1, w2, b2):
    """Exact equivalent of Policy.forward on a single 2-D [B, 4] batch."""
    return policy_forward_batched(x2d[None], w1, b1, w2, b2)[0]


def init_params(key):
    # Deterministic init mimicking nn.Linear default: U(-1/sqrt(fan_in), ...).
    k1, k2, k3, k4 = jax.random.split(key, 4)
    bound1 = 1.0 / jnp.sqrt(4.0)
    bound2 = 1.0 / jnp.sqrt(128.0)
    w1 = jax.random.uniform(k1, (HIDDEN, IN_FEATURES), jnp.float32, -bound1, bound1)
    b1 = jax.random.uniform(k2, (HIDDEN,), jnp.float32, -bound1, bound1)
    w2 = jax.random.uniform(k3, (OUT_FEATURES, HIDDEN), jnp.float32, -bound2, bound2)
    b2 = jax.random.uniform(k4, (OUT_FEATURES,), jnp.float32, -bound2, bound2)
    return w1, b1, w2, b2


def reference_forward(x, w1, b1, w2, b2):
    h = jnp.maximum(x @ w1.T + b1, 0.0)
    logits = h @ w2.T + b2
    return jax.nn.softmax(logits, axis=0)


if __name__ == "__main__":
    key = jax.random.PRNGKey(0)
    kx, kp = jax.random.split(key)
    w1, b1, w2, b2 = init_params(kp)

    # Small deterministic example: G independent policy evaluations, each a
    # complete batch of B states (B=8 = one f32 sublane tile per group).
    G, B = 10, 8
    xg = jax.random.normal(kx, (G, B, IN_FEATURES), jnp.float32)
    ref = jax.vmap(lambda x: reference_forward(x, w1, b1, w2, b2))(xg)

    # 1) Default blocking: everything here fits a single grid step.
    out = jax.block_until_ready(policy_forward_batched(xg, w1, b1, w2, b2))
    assert out.shape == (G, B, OUT_FEATURES)
    assert jnp.allclose(out, ref, atol=1e-3, rtol=1e-3)

    # 2) Force the multi-block path (grid=(3,), with zero-group padding) to
    #    exercise the blocked/"parallel" pipeline as well.
    out_blk = jax.block_until_ready(
        policy_forward_batched(xg, w1, b1, w2, b2, rows_per_block=32))
    assert out_blk.shape == (G, B, OUT_FEATURES)
    assert jnp.allclose(out_blk, ref, atol=1e-3, rtol=1e-3)

    # 3) Single 2-D batch: exact module semantics (softmax over dim=0).
    x2d = xg[0]
    out2d = jax.block_until_ready(policy_forward(x2d, w1, b1, w2, b2))
    ref2d = reference_forward(x2d, w1, b1, w2, b2)
    assert out2d.shape == (B, OUT_FEATURES)
    assert jnp.allclose(out2d, ref2d, atol=1e-3, rtol=1e-3)

    print("KERNEL_OK")
</pallas_src>

<mosaic_0001>
module attributes {stable_mosaic.version = 11 : i64} {
  func.func @_policy_kernel(%arg0: i32, %arg1: memref<10x8x4xf32, #tpu.memory_space<vmem>>, %arg2: memref<4x128xf32, #tpu.memory_space<vmem>>, %arg3: memref<1x128xf32, #tpu.memory_space<vmem>>, %arg4: memref<128x2xf32, #tpu.memory_space<vmem>>, %arg5: memref<1x2xf32, #tpu.memory_space<vmem>>, %arg6: memref<10x8x2xf32, #tpu.memory_space<vmem>>) attributes {dimension_semantics = [#tpu.dimension_semantics<parallel>], iteration_bounds = array<i64: 1>, scalar_prefetch = 0 : i64, scratch_operands = 0 : i64, tpu.core_type = #tpu.core_type<tc>, window_params = [{transform_indices = @transform_0, window_bounds = array<i64: 10, 8, 4>}, {pipeline_mode = #tpu.pipeline_mode<synchronous>, transform_indices = @transform_1, window_bounds = array<i64: 4, 128>}, {pipeline_mode = #tpu.pipeline_mode<synchronous>, transform_indices = @transform_2, window_bounds = array<i64: 1, 128>}, {pipeline_mode = #tpu.pipeline_mode<synchronous>, transform_indices = @transform_3, window_bounds = array<i64: 128, 2>}, {pipeline_mode = #tpu.pipeline_mode<synchronous>, transform_indices = @transform_4, window_bounds = array<i64: 1, 2>}, {transform_indices = @transform_5, window_bounds = array<i64: 10, 8, 2>}]} {
    %c0 = arith.constant 0 : index
    %c0_0 = arith.constant 0 : index
    %c0_1 = arith.constant 0 : index
    %0 = vector.load %arg1[%c0, %c0_0, %c0_1] : memref<10x8x4xf32, #tpu.memory_space<vmem>>, vector<10x8x4xf32>
    %1 = vector.shape_cast %0 : vector<10x8x4xf32> to vector<80x4xf32>
    %c0_2 = arith.constant 0 : index
    %c0_3 = arith.constant 0 : index
    %2 = vector.load %arg2[%c0_2, %c0_3] : memref<4x128xf32, #tpu.memory_space<vmem>>, vector<4x128xf32>
    %cst = arith.constant dense<0.000000e+00> : vector<80x128xf32>
    %3 = tpu.matmul %1, %2, %cst {dimension_numbers = #tpu.dot_dimension_numbers<[1], [0], [0], [1], [0, 0, 1, 1], [], []>} : vector<80x4xf32>, vector<4x128xf32>, vector<80x128xf32> -> vector<80x128xf32>
    %c0_4 = arith.constant 0 : index
    %c0_5 = arith.constant 0 : index
    %4 = vector.load %arg3[%c0_4, %c0_5] : memref<1x128xf32, #tpu.memory_space<vmem>>, vector<1x128xf32>
    %5 = vector.broadcast %4 : vector<1x128xf32> to vector<80x128xf32>
    %6 = arith.addf %3, %5 : vector<80x128xf32>
    %cst_6 = arith.constant 0.000000e+00 : f32
    %7 = vector.broadcast %cst_6 : f32 to vector<80x128xf32>
    %8 = arith.maximumf %6, %7 : vector<80x128xf32>
    %c0_7 = arith.constant 0 : index
    %c0_8 = arith.constant 0 : index
    %9 = vector.load %arg4[%c0_7, %c0_8] : memref<128x2xf32, #tpu.memory_space<vmem>>, vector<128x2xf32>
    %cst_9 = arith.constant dense<0.000000e+00> : vector<80x2xf32>
    %10 = tpu.matmul %8, %9, %cst_9 {dimension_numbers = #tpu.dot_dimension_numbers<[1], [0], [0], [1], [0, 0, 1, 1], [], []>} : vector<80x128xf32>, vector<128x2xf32>, vector<80x2xf32> -> vector<80x2xf32>
    %c0_10 = arith.constant 0 : index
    %c0_11 = arith.constant 0 : index
    %11 = vector.load %arg5[%c0_10, %c0_11] : memref<1x2xf32, #tpu.memory_space<vmem>>, vector<1x2xf32>
    %12 = vector.broadcast %11 : vector<1x2xf32> to vector<80x2xf32>
    %13 = arith.addf %10, %12 : vector<80x2xf32>
    %14 = vector.shape_cast %13 : vector<80x2xf32> to vector<10x8x2xf32>
    %cst_12 = arith.constant dense<0xFF800000> : vector<10x2xf32>
    %15 = vector.multi_reduction <maximumf>, %14, %cst_12 [1] : vector<10x8x2xf32> to vector<10x2xf32>
    %16 = vector.shape_cast %15 : vector<10x2xf32> to vector<10x1x2xf32>
    %17 = vector.broadcast %16 : vector<10x1x2xf32> to vector<10x8x2xf32>
    %18 = arith.subf %14, %17 : vector<10x8x2xf32>
    %19 = math.exp %18 : vector<10x8x2xf32>
    %cst_13 = arith.constant dense<0.000000e+00> : vector<10x2xf32>
    %20 = vector.multi_reduction <add>, %19, %cst_13 [1] : vector<10x8x2xf32> to vector<10x2xf32>
    %21 = vector.shape_cast %20 : vector<10x2xf32> to vector<10x1x2xf32>
    %cst_14 = arith.constant 1.000000e+00 : f32
    %22 = vector.broadcast %cst_14 : f32 to vector<10x1x2xf32>
    %23 = arith.divf %22, %21 : vector<10x1x2xf32>
    %24 = vector.broadcast %23 : vector<10x1x2xf32> to vector<10x8x2xf32>
    %25 = arith.mulf %19, %24 : vector<10x8x2xf32>
    %c0_15 = arith.constant 0 : index
    %c0_16 = arith.constant 0 : index
    %c0_17 = arith.constant 0 : index
    %26 = vector.load %arg6[%c0_15, %c0_16, %c0_17] : memref<10x8x2xf32, #tpu.memory_space<vmem>>, vector<10x8x2xf32>
    tpu.vector_store %arg6[%c0_15, %c0_16, %c0_17], %25 {strides = array<i32>} : memref<10x8x2xf32, #tpu.memory_space<vmem>>, vector<10x8x2xf32>,
    return
  }
  func.func @transform_0(%arg0: i32) -> (i32, i32, i32) {
    %c0_i32 = arith.constant 0 : i32
    %c0_i32_0 = arith.constant 0 : i32
    %c0_i32_1 = arith.constant 0 : i32
    return %arg0, %c0_i32, %c0_i32_0 : i32, i32, i32
  }
  func.func @transform_1(%arg0: i32) -> (i32, i32) {
    %c0_i32 = arith.constant 0 : i32
    %c0_i32_0 = arith.constant 0 : i32
    %c0_i32_1 = arith.constant 0 : i32
    return %c0_i32, %c0_i32_0 : i32, i32
  }
  func.func @transform_2(%arg0: i32) -> (i32, i32) {
    %c0_i32 = arith.constant 0 : i32
    %c0_i32_0 = arith.constant 0 : i32
    %c0_i32_1 = arith.constant 0 : i32
    return %c0_i32, %c0_i32_0 : i32, i32
  }
  func.func @transform_3(%arg0: i32) -> (i32, i32) {
    %c0_i32 = arith.constant 0 : i32
    %c0_i32_0 = arith.constant 0 : i32
    %c0_i32_1 = arith.constant 0 : i32
    return %c0_i32, %c0_i32_0 : i32, i32
  }
  func.func @transform_4(%arg0: i32) -> (i32, i32) {
    %c0_i32 = arith.constant 0 : i32
    %c0_i32_0 = arith.constant 0 : i32
    %c0_i32_1 = arith.constant 0 : i32
    return %c0_i32, %c0_i32_0 : i32, i32
  }
  func.func @transform_5(%arg0: i32) -> (i32, i32, i32) {
    %c0_i32 = arith.constant 0 : i32
    %c0_i32_0 = arith.constant 0 : i32
    %c0_i32_1 = arith.constant 0 : i32
    return %arg0, %c0_i32, %c0_i32_0 : i32, i32, i32
  }
}

</mosaic_0001>

<bundles_post_ra>
// kernel: tpu_custom_call.1
= control target key start
LH: loop header
LB: loop body
LE: loop exit
PB: predicated region body
PF: predicated region fallthrough
CT: control target
= control target key end

     0   :  { %vm69_vm0 = vcmask 1043456   ;;  %vm38_vm1 = vcmask 31744   ;;  %vm336_vm2 = vcmask 15360   ;;  %s992_s1 = inlined_call_operand.vmem [shape: f32[4,128], index: 1, kind: input, shape index: {}]   ;;  %s993_s0 = inlined_call_operand.vmem [shape: f32[10,8,4], index: 0, kind: input, shape index: {}]   ;;  %s994_s3 = inlined_call_operand.vmem [shape: f32[128,2], index: 3, kind: input, shape index: {}]   ;;  %s995_s2 = inlined_call_operand.vmem [shape: f32[1,128], index: 2, kind: input, shape index: {}]   ;;  %s996_s4 = inlined_call_operand.vmem [shape: f32[1,2], index: 4, kind: input, shape index: {}]   ;;  %s997_s5 = inlined_call_operand.vmem [shape: f32[10,8,2], index: 5, kind: output, shape index: {}]  }
   0x1   :  { %v30_v0 = vld [vmem:[%s992_s1] sm:$0xf]  ;;  %v21_v2 = vld [vmem:[%s993_s0 + $0x8] sm:$0xff]  ;;  %v22_v3 = vld [vmem:[%s993_s0 + $0x10] sm:$0xff] }
   0x2   :  { %v20_v1 = vld [vmem:[%s993_s0] sm:$0xff]  ;;  %601 = vmatprep.subr.msk.mxu0 %vm69_vm0, %v30_v0  ;;  %v213_v4 = vld [vmem:[%s994_s3 + $0x78] sm:$0xff]  ;;  %v212_v6 = vld [vmem:[%s994_s3 + $0x70] sm:$0xff] }
   0x3   :  { %603 = vmatprep.mubr.msk.f32.mxu0 %vm38_vm1, %v20_v1  ;;  %602 = vmatpush3.msk.msra.mxu0 %vm69_vm0, %v30_v0  ;;  %v23_v5 = vld [vmem:[%s993_s0 + $0x18] sm:$0xff]  ;;  %v24_v7 = vld [vmem:[%s993_s0 + $0x20] sm:$0xff]  ;;  %v211_v8 = vld [vmem:[%s994_s3 + $0x68] sm:$0xff] }
   0x4   :  { %604 = vmatmul.mubr.msk.f32.vlgmr.msra.gmra.mxu0 %vm38_vm1, %v21_v2  ;;  %618 = vmatprep.subr.mxu0 %v213_v4  ;;  %v25_v9 = vld [vmem:[%s993_s0 + $0x28] sm:$0xff]  ;;  %v210_v10 = vld [vmem:[%s994_s3 + $0x60] sm:$0xff]  ;;  %v26_v11 = vld [vmem:[%s993_s0 + $0x30] sm:$0xff] }
   0x5   :  { %606 = vmatprep.mubr.msk.f32.mxu0 %vm38_vm1, %v22_v3  ;;  %619 = vmatpush3.msra.mxu0 %v213_v4  ;;  %v209_v12 = vld [vmem:[%s994_s3 + $0x58] sm:$0xff]  ;;  %v208_v14 = vld [vmem:[%s994_s3 + $0x50] sm:$0xff]  ;;  %v28_v15 = vld [vmem:[%s993_s0 + $0x40] sm:$0xff] }
   0x6   :  { %665 = vmatprep.subr.mxu1 %v213_v4  ;;  %620 = vmatprep.subr.mxu0 %v212_v6  ;;  %v27_v13 = vld [vmem:[%s993_s0 + $0x38] sm:$0xff]  ;;  %v207_v16 = vld [vmem:[%s994_s3 + $0x48] sm:$0xff]  ;;  %v206_v18 = vld [vmem:[%s994_s3 + $0x40] sm:$0xff] }
   0x7   :  { %681 = vmatpush3.msra.mxu1 %v213_v4  ;;  %621 = vmatpush3.msra.mxu0 %v212_v6  ;;  %v29_v17 = vld [vmem:[%s993_s0 + $0x48] sm:$0xff]  ;;  %v205_v19 = vld [vmem:[%s994_s3 + $0x38] sm:$0xff]  ;;  %v204_v20 = vld [vmem:[%s994_s3 + $0x30] sm:$0xff] }
   0x8   :  { %607 = vmatmul.mubr.msk.f32.gmra.mxu0 %vm38_vm1, %v23_v5  ;;  %666 = vmatprep.subr.mxu1 %v212_v6  ;;  %v203_v21 = vld [vmem:[%s994_s3 + $0x28] sm:$0xff]  ;;  %v202_v22 = vld [vmem:[%s994_s3 + $0x20] sm:$0xff]  ;;  %v201_v23 = vld [vmem:[%s994_s3 + $0x18] sm:$0xff] }
   0x9   :  { %609 = vmatprep.mubr.msk.f32.mxu0 %vm38_vm1, %v24_v7  ;;  %622 = vmatprep.subr.mxu0 %v211_v8  ;;  %v200_v24 = vld [vmem:[%s994_s3 + $0x10] sm:$0xff]  ;;  %v199_v25 = vld [vmem:[%s994_s3 + $0x8] sm:$0xff]  ;;  %v198_v26 = vld [vmem:[%s994_s3] sm:$0xff] }
   0xa   :  { %682 = vmatpush3.msra.mxu1 %v212_v6  ;;  %623 = vmatpush3.msra.mxu0 %v211_v8  ;;  %v551_v27 = vld [vmem:[%s995_s2] ss:$0 sm:$0xff] }
   0xb   :  { %667 = vmatprep.subr.mxu1 %v211_v8  ;;  %624 = vmatprep.subr.mxu0 %v210_v10  ;;  %v864_v58 = vld [vmem:[%s996_s4] ss:$0 sm:$0xff] }
   0xc   :  { %610 = vmatmul.mubr.msk.f32.gmra.mxu0 %vm38_vm1, %v25_v9  ;;  %683 = vmatpush3.msra.mxu1 %v211_v8 }
   0xd   :  { %612 = vmatprep.mubr.msk.f32.mxu0 %vm38_vm1, %v26_v11  ;;  %625 = vmatpush3.msra.mxu0 %v210_v10 }
   0xe   :  { %626 = vmatprep.subr.mxu0 %v209_v12  ;;  %668 = vmatprep.subr.mxu1 %v210_v10 }
   0xf   :  { %627 = vmatpush3.msra.mxu0 %v209_v12  ;;  %684 = vmatpush3.msra.mxu1 %v210_v10 }
  0x10   :  { %613 = vmatmul.mubr.msk.f32.gmra.mxu0 %vm38_vm1, %v27_v13  ;;  %628 = vmatprep.subr.mxu0 %v208_v14 }
  0x11   :  { %615 = vmatprep.mubr.msk.f32.mxu0 %vm38_vm1, %v28_v15  ;;  %629 = vmatpush3.msra.mxu0 %v208_v14 }
  0x12   :  { %630 = vmatprep.subr.mxu0 %v207_v16  ;;  %669 = vmatprep.subr.mxu1 %v209_v12 }
  0x13   :  { %631 = vmatpush3.msra.mxu0 %v207_v16  ;;  %685 = vmatpush3.msra.mxu1 %v209_v12 }
  0x14   :  { %616 = vmatmul.mubr.msk.f32.gmra.mxu0 %vm38_vm1, %v29_v17  ;;  %632 = vmatprep.subr.mxu0 %v206_v18 }
  0x15   :  { %633 = vmatpush3.msra.mxu0 %v206_v18  ;;  %670 = vmatprep.subr.mxu1 %v208_v14 }
  0x16   :  { %634 = vmatprep.subr.mxu0 %v205_v19  ;;  %686 = vmatpush3.msra.mxu1 %v208_v14 }
  0x17   :  { %635 = vmatpush3.msra.mxu0 %v205_v19  ;;  %671 = vmatprep.subr.mxu1 %v207_v16 }
  0x18   :  { %636 = vmatprep.subr.mxu0 %v204_v20  ;;  %687 = vmatpush3.msra.mxu1 %v207_v16 }
  0x19   :  { %637 = vmatpush3.msra.mxu0 %v204_v20  ;;  %672 = vmatprep.subr.mxu1 %v206_v18 }
  0x1a   :  { %638 = vmatprep.subr.mxu0 %v203_v21  ;;  %688 = vmatpush3.msra.mxu1 %v206_v18 }
  0x1b   :  { %639 = vmatpush3.msra.mxu0 %v203_v21  ;;  %673 = vmatprep.subr.mxu1 %v205_v19 }
  0x1c   :  { %640 = vmatprep.subr.mxu0 %v202_v22  ;;  %689 = vmatpush3.msra.mxu1 %v205_v19 }
  0x1d   :  { %641 = vmatpush3.msra.mxu0 %v202_v22  ;;  %674 = vmatprep.subr.mxu1 %v204_v20 }
  0x1e   :  { %690 = vmatpush3.msra.mxu1 %v204_v20  ;;  %642 = vmatprep.subr.mxu0 %v201_v23 }
  0x1f   :  { %675 = vmatprep.subr.mxu1 %v203_v21  ;;  %643 = vmatpush3.msra.mxu0 %v201_v23 }
  0x20   :  { %691 = vmatpush3.msra.mxu1 %v203_v21  ;;  %644 = vmatprep.subr.mxu0 %v200_v24 }
  0x21   :  { %676 = vmatprep.subr.mxu1 %v202_v22  ;;  %645 = vmatpush3.msra.mxu0 %v200_v24 }
  0x22   :  { %692 = vmatpush3.msra.mxu1 %v202_v22  ;;  %646 = vmatprep.subr.mxu0 %v199_v25 }
  0x23   :  { %677 = vmatprep.subr.mxu1 %v201_v23  ;;  %647 = vmatpush3.msra.mxu0 %v199_v25 }
  0x24   :  { %693 = vmatpush3.msra.mxu1 %v201_v23  ;;  %648 = vmatprep.subr.mxu0 %v198_v26 }
  0x25   :  { %678 = vmatprep.subr.mxu1 %v200_v24  ;;  %649 = vmatpush3.msra.mxu0 %v198_v26 }
  0x26   :  { %694 = vmatpush3.msra.mxu1 %v200_v24 }
  0x27   :  { %679 = vmatprep.subr.mxu1 %v199_v25 }
  0x28   :  { %695 = vmatpush3.msra.mxu1 %v199_v25 }
  0x29   :  { %680 = vmatprep.subr.mxu1 %v198_v26 }
  0x2a   :  { %696 = vmatpush3.msra.mxu1 %v198_v26 }
  0xc4   :  { %v605_v28 = vpop.f32.mrf.mxu0 }
  0xc5   :  { %v145_v29 = vadd.f32 %v605_v28, %v551_v27 }
  0xc6   :  { %v139_v30 = vpop.f32.mrf.mxu0 }
  0xc7   :  { %v140_v31 = vadd.f32 %v551_v27, %v139_v30  ;;  %v189_v34 = vmax.f32 %v145_v29, 0.0 }
  0xc8   :  { %v608_v32 = vpop.f32.mrf.mxu0 }
  0xc9   :  { %v188_v33 = vmax.f32 %v140_v31, 0.0  ;;  %v155_v35 = vadd.f32 %v608_v32, %v551_v27 }
  0xca   :  { %v149_v36 = vpop.f32.mrf.mxu0 }
  0xcb   :  { %v150_v37 = vadd.f32 %v551_v27, %v149_v36  ;;  %650 = vmatprep.mubr.f32.mxu0 %v188_v33  ;;  %v191_v40 = vmax.f32 %v155_v35, 0.0 }
  0xcc   :  { %v611_v38 = vpop.f32.mrf.mxu0  ;;  %651 = vmatmul.mubr.f32.vlgmr.msra.gmra.mxu0 %v189_v34 }
  0xcd   :  { %v190_v39 = vmax.f32 %v150_v37, 0.0  ;;  %v165_v41 = vadd.f32 %v611_v38, %v551_v27 }
  0xce   :  { %v159_v42 = vpop.f32.mrf.mxu0 }
  0xcf   :  { %653 = vmatprep.mubr.f32.mxu0 %v190_v39  ;;  %v160_v43 = vadd.f32 %v551_v27, %v159_v42  ;;  %v193_v46 = vmax.f32 %v165_v41, 0.0 }
  0xd0   :  { %v614_v44 = vpop.f32.mrf.mxu0  ;;  %654 = vmatmul.mubr.f32.gmra.mxu0 %v191_v40 }
  0xd1   :  { %v192_v45 = vmax.f32 %v160_v43, 0.0  ;;  %v175_v47 = vadd.f32 %v614_v44, %v551_v27 }
  0xd2   :  { %v169_v48 = vpop.f32.mrf.mxu0 }
  0xd3   :  { %v170_v49 = vadd.f32 %v551_v27, %v169_v48  ;;  %656 = vmatprep.mubr.f32.mxu1 %v192_v45  ;;  %v195_v52 = vmax.f32 %v175_v47, 0.0 }
  0xd4   :  { %v617_v50 = vpop.f32.mrf.mxu0  ;;  %657 = vmatmul.mubr.f32.vlgmr.msra.gmra.mxu1 %v193_v46 }
  0xd5   :  { %v194_v51 = vmax.f32 %v170_v49, 0.0  ;;  %v185_v53 = vadd.f32 %v617_v50, %v551_v27 }
  0xd6   :  { %v179_v54 = vpop.f32.mrf.mxu0 }
  0xd7   :  { %v180_v55 = vadd.f32 %v551_v27, %v179_v54  ;;  %659 = vmatprep.mubr.f32.mxu1 %v194_v51  ;;  %v197_v57 = vmax.f32 %v185_v53, 0.0 }
  0xd8   :  { %660 = vmatmul.mubr.f32.gmra.mxu1 %v195_v52 }
  0xd9   :  { %v196_v56 = vmax.f32 %v180_v55, 0.0 }
  0xdb   :  { %662 = vmatprep.mubr.f32.mxu1 %v196_v56 }
  0xdc   :  { %663 = vmatmul.mubr.f32.gmra.mxu1 %v197_v57 }
 0x18c   :  { %v652_v59 = vpop.f32.mrf.mxu0 }
 0x18d   :  { %v293_v60 = vadd.f32 %v652_v59, %v864_v58 }
 0x18e   :  { %v287_v61 = vpop.f32.mrf.mxu0 }
 0x18f   :  { %v344_v62 = vsel %vm336_vm2, %v293_v60, -inf  ;;  %v288_v63 = vadd.f32 %v864_v58, %v287_v61 }
 0x190   :  { %v345_v0 = vrot.slane %v344_v62, 4  ;;  %v655_v1 = vpop.f32.mrf.mxu0 }
 0x191   :  { %v337_v2 = vsel %vm336_vm2, %v288_v63, -inf  ;;  %v871_v3 = vadd.f32 %v655_v1, %v864_v58 }
 0x192   :  { %v346_v4 = vmax.f32 %v344_v62, %v345_v0  ;;  %v338_v5 = vrot.slane %v337_v2, 4  ;;  %v297_v6 = vpop.f32.mrf.mxu0 }
 0x193   :  { %v358_v7 = vsel %vm336_vm2, %v871_v3, -inf  ;;  %v876_v8 = vadd.f32 %v864_v58, %v297_v6 }
 0x194   :  { %v347_v9 = vrot.slane %v346_v4, 2  ;;  %v339_v10 = vmax.f32 %v337_v2, %v338_v5  ;;  %v359_v11 = vrot.slane %v358_v7, 4  ;;  %v658_v12 = vpop.f32.mrf.mxu1 }
 0x195   :  { %v351_v13 = vsel %vm336_vm2, %v876_v8, -inf  ;;  %v881_v14 = vadd.f32 %v658_v12, %v864_v58 }
 0x196   :  { %v348_v15 = vmax.f32 %v346_v4, %v347_v9  ;;  %v340_v16 = vrot.slane %v339_v10, 2  ;;  %v360_v17 = vmax.f32 %v358_v7, %v359_v11  ;;  %v352_v18 = vrot.slane %v351_v13, 4  ;;  %v307_v19 = vpop.f32.mrf.mxu1 }
 0x197   :  { %v372_v20 = vsel %vm336_vm2, %v881_v14, -inf  ;;  %v886_v21 = vadd.f32 %v864_v58, %v307_v19 }
 0x198   :  { %v349_v22 = vrot.slane %v348_v15, 1  ;;  %v341_v23 = vmax.f32 %v339_v10, %v340_v16  ;;  %v361_v24 = vrot.slane %v360_v17, 2  ;;  %v353_v25 = vmax.f32 %v351_v13, %v352_v18  ;;  %v661_v26 = vpop.f32.mrf.mxu1 }
 0x199   :  { %v373_v27 = vrot.slane %v372_v20, 4  ;;  %v365_v28 = vsel %vm336_vm2, %v886_v21, -inf  ;;  %v891_v29 = vadd.f32 %v661_v26, %v864_v58 }
 0x19a   :  { %v350_v30 = vmax.f32 %v348_v15, %v349_v22  ;;  %v342_v31 = vrot.slane %v341_v23, 1  ;;  %v362_v32 = vmax.f32 %v360_v17, %v361_v24  ;;  %v354_v33 = vrot.slane %v353_v25, 2  ;;  %v317_v34 = vpop.f32.mrf.mxu1 }
 0x19b   :  { %v374_v35 = vmax.f32 %v372_v20, %v373_v27  ;;  %v366_v36 = vrot.slane %v365_v28, 4  ;;  %v386_v37 = vsel %vm336_vm2, %v891_v29, -inf  ;;  %v896_v38 = vadd.f32 %v864_v58, %v317_v34 }
 0x19c   :  { %v408_v39 = vsub.f32 %v293_v60, %v350_v30  ;;  %v343_v40 = vmax.f32 %v341_v23, %v342_v31  ;;  %v363_v41 = vrot.slane %v362_v32, 1  ;;  %v355_v42 = vmax.f32 %v353_v25, %v354_v33  ;;  %v664_v47 = vpop.f32.mrf.mxu1 }
 0x19d   :  { %v375_v43 = vrot.slane %v374_v35, 2  ;;  %v367_v44 = vmax.f32 %v365_v28, %v366_v36  ;;  %v387_v45 = vrot.slane %v386_v37, 4  ;;  %v379_v46 = vsel %vm336_vm2, %v896_v38, -inf }
 0x19e   :  { %v419_v48 = vmul.f32 1.442695, %v408_v39  ;;  %v407_v49 = vsub.f32 %v288_v63, %v343_v40  ;;  %v364_v50 = vmax.f32 %v362_v32, %v363_v41  ;;  %v356_v51 = vrot.slane %v355_v42, 1  ;;  %v327_v1 = vpop.f32.mrf.mxu1 }
 0x19f   :  { %v376_v52 = vmax.f32 %v374_v35, %v375_v43  ;;  %v368_v53 = vrot.slane %v367_v44, 2  ;;  %v388_v54 = vmax.f32 %v386_v37, %v387_v45  ;;  %v380_v55 = vrot.slane %v379_v46, 4 }
 0x1a0   :  { %697 = vpow2.f32 %v419_v48  ;;  %v417_v56 = vmul.f32 1.442695, %v407_v49  ;;  %v410_v57 = vsub.f32 %v871_v3, %v364_v50  ;;  %v357_v59 = vmax.f32 %v355_v42, %v356_v51 }
 0x1a1   :  { %v377_v60 = vrot.slane %v376_v52, 1  ;;  %v369_v61 = vmax.f32 %v367_v44, %v368_v53  ;;  %v389_v62 = vrot.slane %v388_v54, 2  ;;  %v381_v0 = vmax.f32 %v379_v46, %v380_v55 }
 0x1a2   :  { %699 = vpow2.f32 %v417_v56  ;;  %v423_v2 = vmul.f32 1.442695, %v410_v57  ;;  %v409_v63 = vsub.f32 %v876_v8, %v357_v59  ;;  %v333_v4 = vadd.f32 %v664_v47, %v864_v58 }
 0x1a3   :  { %v378_v5 = vmax.f32 %v376_v52, %v377_v60  ;;  %v370_v6 = vrot.slane %v369_v61, 1  ;;  %v390_v7 = vmax.f32 %v388_v54, %v389_v62  ;;  %v382_v9 = vrot.slane %v381_v0, 2 }
 0x1a4   :  { %701 = vpow2.f32 %v423_v2  ;;  %v421_v10 = vmul.f32 1.442695, %v409_v63  ;;  %v400_v3 = vsel %vm336_vm2, %v333_v4, -inf  ;;  %v328_v11 = vadd.f32 %v864_v58, %v327_v1 }
 0x1a5   :  { %v412_v12 = vsub.f32 %v881_v14, %v378_v5  ;;  %v371_v13 = vmax.f32 %v369_v61, %v370_v6  ;;  %v391_v15 = vrot.slane %v390_v7, 1  ;;  %v383_v16 = vmax.f32 %v381_v0, %v382_v9 }
 0x1a6   :  { %703 = vpow2.f32 %v421_v10  ;;  %v401_v17 = vrot.slane %v400_v3, 4  ;;  %v393_v8 = vsel %vm336_vm2, %v328_v11, -inf }
 0x1a7   :  { %v427_v18 = vmul.f32 1.442695, %v412_v12  ;;  %v411_v19 = vsub.f32 %v886_v21, %v371_v13  ;;  %v392_v20 = vmax.f32 %v390_v7, %v391_v15  ;;  %v384_v22 = vrot.slane %v383_v16, 1 }
 0x1a8   :  { %v402_v23 = vmax.f32 %v400_v3, %v401_v17  ;;  %v394_v24 = vrot.slane %v393_v8, 4 }
 0x1a9   :  { %705 = vpow2.f32 %v427_v18  ;;  %v425_v25 = vmul.f32 1.442695, %v411_v19  ;;  %v414_v58 = vsub.f32 %v891_v29, %v392_v20  ;;  %v385_v26 = vmax.f32 %v383_v16, %v384_v22 }
 0x1aa   :  { %v403_v14 = vrot.slane %v402_v23, 2  ;;  %v395_v27 = vmax.f32 %v393_v8, %v394_v24 }
 0x1ab   :  { %707 = vpow2.f32 %v425_v25  ;;  %v431_v28 = vmul.f32 1.442695, %v414_v58  ;;  %v413_v30 = vsub.f32 %v896_v38, %v385_v26 }
 0x1ac   :  { %v404_v31 = vmax.f32 %v402_v23, %v403_v14  ;;  %v396_v32 = vrot.slane %v395_v27, 2 }
 0x1ad   :  { %v910_v33 = vpop.eup %697  ;;  %709 = vpow2.f32 %v431_v28  ;;  %v429_v21 = vmul.f32 1.442695, %v413_v30 }
 0x1ae   :  { %v444_v34 = vsel %vm336_vm2, %v910_v33, 0.0  ;;  %v405_v35 = vrot.slane %v404_v31, 1  ;;  %v397_v36 = vmax.f32 %v395_v27, %v396_v32 }
 0x1af   :  { %v914_v37 = vpop.eup %699  ;;  %v445_v29 = vrot.slane %v444_v34, 4  ;;  %711 = vpow2.f32 %v429_v21 }
 0x1b0   :  { %v437_v39 = vsel %vm336_vm2, %v914_v37, 0.0  ;;  %v406_v40 = vmax.f32 %v404_v31, %v405_v35  ;;  %v398_v38 = vrot.slane %v397_v36, 1 }
 0x1b1   :  { %v918_v41 = vpop.eup %701  ;;  %v446_v42 = vadd.f32 %v445_v29, %v444_v34  ;;  %v438_v43 = vrot.slane %v437_v39, 4 }
 0x1b2   :  { %v458_v44 = vsel %vm336_vm2, %v918_v41, 0.0  ;;  %v416_v45 = vsub.f32 %v333_v4, %v406_v40  ;;  %v399_v46 = vmax.f32 %v397_v36, %v398_v38 }
 0x1b3   :  { %v922_v47 = vpop.eup %703  ;;  %v447_v48 = vrot.slane %v446_v42, 2  ;;  %v439_v49 = vadd.f32 %v438_v43, %v437_v39  ;;  %v459_v50 = vrot.slane %v458_v44, 4 }
 0x1b4   :  { %v451_v51 = vsel %vm336_vm2, %v922_v47, 0.0  ;;  %v435_v52 = vmul.f32 1.442695, %v416_v45  ;;  %v415_v53 = vsub.f32 %v328_v11, %v399_v46 }
 0x1b5   :  { %v448_v54 = vadd.f32 %v447_v48, %v446_v42  ;;  %v440_v55 = vrot.slane %v439_v49, 2  ;;  %v460_v56 = vadd.f32 %v459_v50, %v458_v44  ;;  %v452_v57 = vrot.slane %v451_v51, 4 }
 0x1b6   :  { %v926_v59 = vpop.eup %705  ;;  %713 = vpow2.f32 %v435_v52  ;;  %v433_v60 = vmul.f32 1.442695, %v415_v53 }
 0x1b7   :  { %v449_v61 = vrot.slane %v448_v54, 1  ;;  %v441_v62 = vadd.f32 %v440_v55, %v439_v49  ;;  %v461_v0 = vrot.slane %v460_v56, 2  ;;  %v453_v1 = vadd.f32 %v452_v57, %v451_v51 }
 0x1b8   :  { %v928_v2 = vpop.eup %707  ;;  %v472_v63 = vsel %vm336_vm2, %v926_v59, 0.0  ;;  %715 = vpow2.f32 %v433_v60 }
 0x1b9   :  { %v450_v4 = vadd.f32 %v449_v61, %v448_v54  ;;  %v442_v5 = vrot.slane %v441_v62, 1  ;;  %v462_v6 = vadd.f32 %v461_v0, %v460_v56  ;;  %v454_v7 = vrot.slane %v453_v1, 2 }
 0x1ba   :  { %v932_v9 = vpop.eup %709  ;;  %v473_v10 = vrot.slane %v472_v63, 4  ;;  %v465_v3 = vsel %vm336_vm2, %v928_v2, 0.0 }
 0x1bb   :  { %717 = vrcp.f32 %v450_v4  ;;  %v443_v11 = vadd.f32 %v442_v5, %v441_v62  ;;  %v463_v12 = vrot.slane %v462_v6, 1  ;;  %v455_v13 = vadd.f32 %v454_v7, %v453_v1 }
 0x1bc   :  { %v936_v15 = vpop.eup %711  ;;  %v474_v16 = vadd.f32 %v473_v10, %v472_v63  ;;  %v466_v17 = vrot.slane %v465_v3, 4  ;;  %v486_v8 = vsel %vm336_vm2, %v932_v9, 0.0 }
 0x1bd   :  { %719 = vrcp.f32 %v443_v11  ;;  %v464_v18 = vadd.f32 %v463_v12, %v462_v6  ;;  %v456_v19 = vrot.slane %v455_v13, 1  ;;  %v487_v20 = vrot.slane %v486_v8, 4 }
 0x1be   :  { %v475_v22 = vrot.slane %v474_v16, 2  ;;  %v467_v23 = vadd.f32 %v466_v17, %v465_v3  ;;  %v479_v24 = vsel %vm336_vm2, %v936_v15, 0.0 }
 0x1bf   :  { %721 = vrcp.f32 %v464_v18  ;;  %v457_v25 = vadd.f32 %v456_v19, %v455_v13  ;;  %v488_v58 = vadd.f32 %v487_v20, %v486_v8  ;;  %v480_v26 = vrot.slane %v479_v24, 4 }
 0x1c0   :  { %v476_v14 = vadd.f32 %v475_v22, %v474_v16  ;;  %v468_v27 = vrot.slane %v467_v23, 2 }
 0x1c1   :  { %723 = vrcp.f32 %v457_v25  ;;  %v489_v28 = vrot.slane %v488_v58, 2  ;;  %v481_v30 = vadd.f32 %v480_v26, %v479_v24 }
 0x1c2   :  { %v477_v31 = vrot.slane %v476_v14, 1  ;;  %v469_v32 = vadd.f32 %v468_v27, %v467_v23 }
 0x1c3   :  { %v714_v21 = vpop.eup %713  ;;  %v490_v34 = vadd.f32 %v489_v28, %v488_v58  ;;  %v482_v35 = vrot.slane %v481_v30, 2 }
 0x1c4   :  { %v478_v36 = vadd.f32 %v477_v31, %v476_v14  ;;  %v470_v29 = vrot.slane %v469_v32, 1  ;;  %v500_v39 = vsel %vm336_vm2, %v714_v21, 0.0 }
 0x1c5   :  { %v716_v40 = vpop.eup %715  ;;  %v491_v38 = vrot.slane %v490_v34, 1  ;;  %v483_v42 = vadd.f32 %v482_v35, %v481_v30  ;;  %v501_v43 = vrot.slane %v500_v39, 4 }
 0x1c6   :  { %725 = vrcp.f32 %v478_v36  ;;  %v471_v44 = vadd.f32 %v470_v29, %v469_v32  ;;  %v493_v45 = vsel %vm336_vm2, %v716_v40, 0.0 }
 0x1c7   :  { %v492_v46 = vadd.f32 %v491_v38, %v490_v34  ;;  %v484_v48 = vrot.slane %v483_v42, 1  ;;  %v502_v49 = vadd.f32 %v501_v43, %v500_v39  ;;  %v494_v50 = vrot.slane %v493_v45, 4 }
 0x1c8   :  { %v718_v51 = vpop.eup %717  ;;  %727 = vrcp.f32 %v471_v44 }
 0x1c9   :  { %v528_v52 = vmul.f32 %v718_v51, %v910_v33  ;;  %729 = vrcp.f32 %v492_v46  ;;  %v485_v53 = vadd.f32 %v484_v48, %v483_v42  ;;  %v503_v54 = vrot.slane %v502_v49, 2 }
 0x1ca   :  { %v720_v55 = vpop.eup %719  ;;  %v495_v56 = vadd.f32 %v494_v50, %v493_v45 }
 0x1cb   :  { %538 = vst.msk [vmem:[%s997_s5 + $0x8] sm:$0xff] %vm336_vm2, %v528_v52  ;;  %v527_v57 = vmul.f32 %v720_v55, %v914_v37  ;;  %731 = vrcp.f32 %v485_v53  ;;  %v504_v60 = vadd.f32 %v503_v54, %v502_v49 }
 0x1cc   :  { %v722_v61 = vpop.eup %721  ;;  %v496_v62 = vrot.slane %v495_v56, 2 }
 0x1cd   :  { %537 = vst.msk [vmem:[%s997_s5] sm:$0xff] %vm336_vm2, %v527_v57  ;;  %v530_v33 = vmul.f32 %v722_v61, %v918_v41  ;;  %v505_v0 = vrot.slane %v504_v60, 1 }
 0x1ce   :  { %v724_v1 = vpop.eup %723  ;;  %v497_v63 = vadd.f32 %v496_v62, %v495_v56 }
 0x1cf   :  { %540 = vst.msk [vmem:[%s997_s5 + $0x18] sm:$0xff] %vm336_vm2, %v530_v33  ;;  %v529_v37 = vmul.f32 %v724_v1, %v922_v47  ;;  %v506_v4 = vadd.f32 %v505_v0, %v504_v60 }
 0x1d0   :  { %v498_v5 = vrot.slane %v497_v63, 1 }
 0x1d1   :  { %539 = vst.msk [vmem:[%s997_s5 + $0x10] sm:$0xff] %vm336_vm2, %v529_v37  ;;  %733 = vrcp.f32 %v506_v4 }
 0x1d2   :  { %v499_v6 = vadd.f32 %v498_v5, %v497_v63 }
 0x1d3   :  { %v726_v41 = vpop.eup %725 }
 0x1d4   :  { %v532_v7 = vmul.f32 %v726_v41, %v926_v59  ;;  %735 = vrcp.f32 %v499_v6 }
 0x1d5   :  { %v728_v10 = vpop.eup %727 }
 0x1d6   :  { %v730_v3 = vpop.eup %729  ;;  %542 = vst.msk [vmem:[%s997_s5 + $0x28] sm:$0xff] %vm336_vm2, %v532_v7  ;;  %v531_v47 = vmul.f32 %v728_v10, %v928_v2 }
 0x1d7   :  { %v534_v11 = vmul.f32 %v730_v3, %v932_v9 }
 0x1d8   :  { %v732_v12 = vpop.eup %731  ;;  %541 = vst.msk [vmem:[%s997_s5 + $0x20] sm:$0xff] %vm336_vm2, %v531_v47 }
 0x1d9   :  { %544 = vst.msk [vmem:[%s997_s5 + $0x38] sm:$0xff] %vm336_vm2, %v534_v11  ;;  %v533_v59 = vmul.f32 %v732_v12, %v936_v15 }
 0x1db   :  { %543 = vst.msk [vmem:[%s997_s5 + $0x30] sm:$0xff] %vm336_vm2, %v533_v59 }
 0x1de   :  { %v734_v2 = vpop.eup %733 }
 0x1df   :  { %v536_v9 = vmul.f32 %v734_v2, %v714_v21 }
 0x1e1   :  { %v736_v13 = vpop.eup %735  ;;  %546 = vst.msk [vmem:[%s997_s5 + $0x48] sm:$0xff] %vm336_vm2, %v536_v9 }
 0x1e2   :  { %v535_v16 = vmul.f32 %v736_v13, %v716_v40 }
 0x1e4   :  { %545 = vst.msk [vmem:[%s997_s5 + $0x40] sm:$0xff] %vm336_vm2, %v535_v16 }

</bundles_post_ra>
